<compile_context>
chip_gen: v5e
topology: v5e:2x2
jax: 0.10.0
libtpu: 0.0.40
codegen_flags: <defaults>
</compile_context>

<pallas_src>
import jax
import jax.numpy as jnp
from jax.experimental import pallas as pl
from jax.experimental.pallas import tpu as pltpu

OUT_CH = 256


def upsample_kernel(x1_ref, x2_ref, w_ref, b_ref, o_ref):
    # x1_ref: (TH, W, 256)      coarse feature rows (to be nearest-upsampled 2x)
    # x2_ref: (2*TH*W, 2*Cin)   fine rows; dx (odd/even column) parity packed into lanes
    # w_ref : (2*Cin, 512)      block-diagonal 1x1-conv weight (one (Cin,256) copy per parity)
    # b_ref : (1, 512)
    # o_ref : (2*TH*W, 512)     output rows; dx parity packed into lanes
    th, w, c = x1_ref.shape

    # 1x1 conv for both column parities in a single MXU matmul, f32 accumulation.
    conv = jnp.dot(x2_ref[...], w_ref[...],
                   preferred_element_type=jnp.float32) + b_ref[...]

    # Nearest-neighbour 2x upsample of x1, entirely in VMEM.
    x1 = x1_ref[...].astype(jnp.float32)                      # (TH, W, 256)
    # column (dx) duplication: identical channels for both parities -> lane concat to 512
    x1 = jnp.concatenate([x1, x1], axis=-1)                   # (TH, W, 512)
    # row (dy) duplication: broadcast over a leading axis, then tile-aligned collapse
    x1 = jnp.broadcast_to(x1[:, None, :, :], (th, 2, w, 2 * c))
    x1 = x1.reshape(2 * th * w, 2 * c)                        # (2*TH*W, 512)

    o_ref[...] = (x1 + conv).astype(o_ref.dtype)


def _choose_row_tile(h, w, cin, itemsize, budget_bytes=10 << 20):
    """Largest divisor TH of h whose per-step VMEM footprint fits the budget."""
    # per coarse row: double-buffered x1/x2/out blocks + ~2.5x out-tile of in-kernel temporaries
    per_row = itemsize * w * (2 * (5 * OUT_CH + 4 * cin) + 10 * OUT_CH)
    cap = max(1, budget_bytes // per_row)
    sub = 32 // itemsize                      # sublane multiple: 8 (f32) / 16 (bf16) / 32 (int8)
    valid = [d for d in range(1, h + 1)
             if h % d == 0 and (d == h or (2 * d * w) % sub == 0)]
    under = [d for d in valid if d <= cap]
    return max(under) if under else min(valid)


def upsample_forward(x1_nchw, x2_nchw, w, b):
    """x1_nchw: (N, 256, H, W); x2_nchw: (N, Cin, 2H, 2W); w: (256, Cin, 1, 1); b: (256,)."""
    n, c1, h, wdim = x1_nchw.shape
    _, cin, h2, w2dim = x2_nchw.shape
    assert c1 == OUT_CH and h2 == 2 * h and w2dim == 2 * wdim

    itemsize = jnp.dtype(x1_nchw.dtype).itemsize
    th = _choose_row_tile(h, wdim, cin, itemsize)

    # NCHW -> NHWC glue (required only because the PyTorch interface is NCHW).
    # TODO(synk): remove if the surrounding model is NHWC; the kernel never permutes data in HBM.
    x1 = jnp.transpose(x1_nchw, (0, 2, 3, 1))                 # (N, H, W, 256)
    x2 = jnp.transpose(x2_nchw, (0, 2, 3, 1))                 # (N, 2H, 2W, Cin)

    # Free (contiguity-preserving) reshape: pack the column parity into the lane dim.
    x2p = x2.reshape(n, 2 * h * wdim, 2 * cin)                # (N, 2H*W, 2*Cin)

    # Block-diagonal 1x1-conv weight: one (Cin, 256) copy per column parity.
    wt = w.reshape(OUT_CH, cin).T.astype(x2.dtype)            # (Cin, 256)
    zeros = jnp.zeros_like(wt)
    w2 = jnp.concatenate(
        [jnp.concatenate([wt, zeros], axis=1),
         jnp.concatenate([zeros, wt], axis=1)], axis=0)       # (2*Cin, 512)
    b2 = jnp.concatenate([b, b]).reshape(1, 2 * OUT_CH).astype(jnp.float32)

    out_elems = n * 4 * h * wdim * OUT_CH
    cost = pl.CostEstimate(
        flops=2 * n * 4 * h * wdim * cin * OUT_CH,
        transcendentals=0,
        bytes_accessed=(x1.size + x2.size + out_elems) * itemsize)

    out_p = pl.pallas_call(
        upsample_kernel,
        out_shape=jax.ShapeDtypeStruct((n, 2 * h * wdim, 2 * OUT_CH), x1.dtype),
        grid=(n, h // th),
        in_specs=[
            pl.BlockSpec((None, th, wdim, OUT_CH), lambda ni, hi: (ni, hi, 0, 0)),
            pl.BlockSpec((None, 2 * th * wdim, 2 * cin), lambda ni, hi: (ni, hi, 0)),
            pl.BlockSpec((2 * cin, 2 * OUT_CH), lambda ni, hi: (0, 0)),
            pl.BlockSpec((1, 2 * OUT_CH), lambda ni, hi: (0, 0)),
        ],
        out_specs=pl.BlockSpec((None, 2 * th * wdim, 2 * OUT_CH),
                               lambda ni, hi: (ni, hi, 0)),
        compiler_params=pltpu.CompilerParams(
            dimension_semantics=("parallel", "parallel"),
            vmem_limit_bytes=32 * 1024 * 1024),
        cost_estimate=cost,
    )(x1, x2p, w2, b2)

    # Free reshape back to NHWC, then NHWC -> NCHW glue.
    out = out_p.reshape(n, 2 * h, 2 * wdim, OUT_CH)
    return jnp.transpose(out, (0, 3, 1, 2))


def reference_forward(x1_nchw, x2_nchw, w, b):
    x1_up = jnp.repeat(jnp.repeat(x1_nchw, 2, axis=2), 2, axis=3)
    conv = jnp.einsum('nchw,oc->nohw', x2_nchw, w.reshape(OUT_CH, -1)) + b[None, :, None, None]
    return x1_up + conv


if __name__ == "__main__":
    key = jax.random.PRNGKey(0)
    k1, k2, kw, kb = jax.random.split(key, 4)

    N, Cin, H, W = 2, 4, 8, 8          # x1 is (N, 256, H, W); x2 is (N, Cin, 2H, 2W)
    x1 = jax.random.normal(k1, (N, OUT_CH, H, W), dtype=jnp.float32)
    x2 = jax.random.normal(k2, (N, Cin, 2 * H, 2 * W), dtype=jnp.float32)

    # deterministic Conv2d(Cin, 256, kernel_size=1) parameters
    w = jax.random.normal(kw, (OUT_CH, Cin, 1, 1), dtype=jnp.float32) * (1.0 / jnp.sqrt(Cin))
    b = jax.random.normal(kb, (OUT_CH,), dtype=jnp.float32) * 0.1

    out = jax.jit(upsample_forward)(x1, x2, w, b)
    out = jax.block_until_ready(out)

    ref = reference_forward(x1, x2, w, b)
    assert out.shape == (N, OUT_CH, 2 * H, 2 * W)
    assert jnp.allclose(out, ref, atol=1e-4, rtol=1e-4)
    print("KERNEL_OK")
</pallas_src>

<mosaic_0001>
module attributes {stable_mosaic.version = 11 : i64} {
  func.func @upsample_kernel(%arg0: i32, %arg1: i32, %arg2: memref<1x8x8x256xf32, #tpu.memory_space<vmem>>, %arg3: memref<1x128x8xf32, #tpu.memory_space<vmem>>, %arg4: memref<8x512xf32, #tpu.memory_space<vmem>>, %arg5: memref<1x512xf32, #tpu.memory_space<vmem>>, %arg6: memref<1x128x512xf32, #tpu.memory_space<vmem>>) attributes {dimension_semantics = [#tpu.dimension_semantics<parallel>, #tpu.dimension_semantics<parallel>], iteration_bounds = array<i64: 2, 1>, scalar_prefetch = 0 : i64, scratch_operands = 0 : i64, tpu.core_type = #tpu.core_type<tc>, window_params = [{transform_indices = @transform_0, window_bounds = array<i64: 1, 8, 8, 256>}, {transform_indices = @transform_1, window_bounds = array<i64: 1, 128, 8>}, {pipeline_mode = #tpu.pipeline_mode<synchronous>, transform_indices = @transform_2, window_bounds = array<i64: 8, 512>}, {pipeline_mode = #tpu.pipeline_mode<synchronous>, transform_indices = @transform_3, window_bounds = array<i64: 1, 512>}, {transform_indices = @transform_4, window_bounds = array<i64: 1, 128, 512>}]} {
    %c0 = arith.constant 0 : index
    %c0_0 = arith.constant 0 : index
    %c0_1 = arith.constant 0 : index
    %0 = vector.load %arg3[%c0, %c0_0, %c0_1] : memref<1x128x8xf32, #tpu.memory_space<vmem>>, vector<1x128x8xf32>
    %1 = vector.shape_cast %0 : vector<1x128x8xf32> to vector<128x8xf32>
    %c0_2 = arith.constant 0 : index
    %c0_3 = arith.constant 0 : index
    %2 = vector.load %arg4[%c0_2, %c0_3] : memref<8x512xf32, #tpu.memory_space<vmem>>, vector<8x512xf32>
    %cst = arith.constant dense<0.000000e+00> : vector<128x512xf32>
    %3 = tpu.matmul %1, %2, %cst {dimension_numbers = #tpu.dot_dimension_numbers<[1], [0], [0], [1], [0, 0, 1, 1], [], []>} : vector<128x8xf32>, vector<8x512xf32>, vector<128x512xf32> -> vector<128x512xf32>
    %c0_4 = arith.constant 0 : index
    %c0_5 = arith.constant 0 : index
    %4 = vector.load %arg5[%c0_4, %c0_5] : memref<1x512xf32, #tpu.memory_space<vmem>>, vector<1x512xf32>
    %5 = vector.broadcast %4 : vector<1x512xf32> to vector<128x512xf32>
    %6 = arith.addf %3, %5 : vector<128x512xf32>
    %c0_6 = arith.constant 0 : index
    %c0_7 = arith.constant 0 : index
    %c0_8 = arith.constant 0 : index
    %c0_9 = arith.constant 0 : index
    %7 = vector.load %arg2[%c0_6, %c0_7, %c0_8, %c0_9] : memref<1x8x8x256xf32, #tpu.memory_space<vmem>>, vector<1x8x8x256xf32>
    %8 = vector.shape_cast %7 : vector<1x8x8x256xf32> to vector<8x8x256xf32>
    %9 = tpu.concatenate %8, %8 in 2 : vector<8x8x256xf32>, vector<8x8x256xf32> -> vector<8x8x512xf32>
    %10 = vector.shape_cast %9 : vector<8x8x512xf32> to vector<8x1x8x512xf32>
    %11 = vector.shape_cast %10 : vector<8x1x8x512xf32> to vector<8x1x8x512xf32>
    %12 = vector.broadcast %11 : vector<8x1x8x512xf32> to vector<8x2x8x512xf32>
    %13 = vector.shape_cast %12 : vector<8x2x8x512xf32> to vector<128x512xf32>
    %14 = arith.addf %13, %6 : vector<128x512xf32>
    %c0_10 = arith.constant 0 : index
    %c0_11 = arith.constant 0 : index
    %c0_12 = arith.constant 0 : index
    %15 = vector.load %arg6[%c0_10, %c0_11, %c0_12] : memref<1x128x512xf32, #tpu.memory_space<vmem>>, vector<1x128x512xf32>
    %16 = vector.shape_cast %15 : vector<1x128x512xf32> to vector<128x512xf32>
    %17 = vector.shape_cast %14 : vector<128x512xf32> to vector<1x128x512xf32>
    tpu.vector_store %arg6[%c0_10, %c0_11, %c0_12], %17 {strides = array<i32>} : memref<1x128x512xf32, #tpu.memory_space<vmem>>, vector<1x128x512xf32>,
    return
  }
  func.func @transform_0(%arg0: i32, %arg1: i32) -> (i32, i32, i32, i32) {
    %c0_i32 = arith.constant 0 : i32
    %c0_i32_0 = arith.constant 0 : i32
    %c0_i32_1 = arith.constant 0 : i32
    return %arg0, %arg1, %c0_i32, %c0_i32_0 : i32, i32, i32, i32
  }
  func.func @transform_1(%arg0: i32, %arg1: i32) -> (i32, i32, i32) {
    %c0_i32 = arith.constant 0 : i32
    %c0_i32_0 = arith.constant 0 : i32
    return %arg0, %arg1, %c0_i32 : i32, i32, i32
  }
  func.func @transform_2(%arg0: i32, %arg1: i32) -> (i32, i32) {
    %c0_i32 = arith.constant 0 : i32
    %c0_i32_0 = arith.constant 0 : i32
    %c0_i32_1 = arith.constant 0 : i32
    return %c0_i32, %c0_i32_0 : i32, i32
  }
  func.func @transform_3(%arg0: i32, %arg1: i32) -> (i32, i32) {
    %c0_i32 = arith.constant 0 : i32
    %c0_i32_0 = arith.constant 0 : i32
    %c0_i32_1 = arith.constant 0 : i32
    return %c0_i32, %c0_i32_0 : i32, i32
  }
  func.func @transform_4(%arg0: i32, %arg1: i32) -> (i32, i32, i32) {
    %c0_i32 = arith.constant 0 : i32
    %c0_i32_0 = arith.constant 0 : i32
    return %arg0, %arg1, %c0_i32 : i32, i32, i32
  }
}

</mosaic_0001>

<bundles_post_ra>
// kernel: upsample_forward.1
= control target key start
LH: loop header
LB: loop body
LE: loop exit
PB: predicated region body
PF: predicated region fallthrough
CT: control target
= control target key end

     0   :  { %s1028_s15 = smov 0   ;;  %s1030_s16 = smov 0   ;;  %s1325_s0 = inlined_call_operand.vmem [shape: f32[2,8,8,256], index: 0, kind: input, shape index: {}]   ;;  %s1326_s1 = inlined_call_operand.vmem [shape: f32[2,128,8], index: 1, kind: input, shape index: {}]   ;;  %s1327_s2 = inlined_call_operand.vmem [shape: f32[8,512], index: 2, kind: input, shape index: {}]   ;;  %s1328_s3 = inlined_call_operand.vmem [shape: f32[1,512], index: 3, kind: input, shape index: {}]   ;;  %s1329_s4 = inlined_call_operand.vmem [shape: f32[2,128,512], index: 4, kind: output, shape index: {}]  }
   0x1   :  { %s1032_s17 = smov 0  }
   0x2 LB: > { %s26_s18 = sadd.s32 1, %s997_s16  ;;  %p879_p0 = scmp.ge.s32.totalorder %s1001_s17, 1  ;;  %s1001_s17 = sphi %s1032_s17, %s14_s17   ;;  %s997_s16 = sphi %s1030_s16, %s1331_s16   ;;  %s993_s15 = sphi %s1028_s15, %s1330_s15  }
   0x3   : > { %p28_p1 = scmp.ge.s32.totalorder %s26_s18, 2  ;;  %p201_p2 = scmp.lt.s32.totalorder %s1001_s17, 3 }
   0x5   : > { %s1333_s18 = smov (%p28_p1, %s26_s18), 0  ;;  %p202_p3 = pnand %p879_p0, %p201_p2 }
   0x6   : > { %p247_p4 = scmp.lt.s32.totalorder (!%p202_p3), %s993_s15, 1 }
   0x7   : > { %205 = sbr.rel (%p202_p3) target bundleno = 274 (0x112), region = 36 }
   0xc   : > { %v296_v0 = vld [vmem:[%s1327_s2 + $0x10] sm:$0xff]  ;;  %v297_v1 = vld [vmem:[%s1327_s2 + $0x18] sm:$0xff]  ;;  %v294_v2 = vld [vmem:[%s1327_s2] sm:$0xff]  ;;  %s1335_s15 = smov (!%p247_p4, %s993_s15), 1  ;;  %vm308_vm0 = vcmask 64512  }
   0xd   : > { %502 = vmatpush.msra.mxu2 %v296_v0  ;;  %567 = vmatpush.msra.mxu3 %v297_v1  ;;  %v295_v3 = vld [vmem:[%s1327_s2 + $0x8] sm:$0xff]  ;;  %s952_s27 = sshll.u32 %s1335_s15, 7  ;;  %v298_v20 = vld [vmem:[%s1328_s3] sm:$0xf]  ;;  %s954_s10 = sshll.u32 %s1335_s15, 9 }
   0xe   : > { %372 = vmatpush.msra.mxu0 %v294_v2  ;;  %437 = vmatpush.msra.mxu1 %v295_v3  ;;  %s1066_s30 = scalar_lea.vmem %s1326_s1, %s952_s27  ;;  %s1156_s9 = scalar_lea.vmem %s1325_s0, %s952_s27  ;;  %v1158_v21 = vperm.slane %v298_v20, 0  ;;  %v1160_v22 = vperm.slane %v298_v20, 1  ;;  %v1172_v29 = vperm.slane %v298_v20, 2  ;;  %v1174_v30 = vperm.slane %v298_v20, 3 }
   0xf   : > { %v278_v4 = vld [vmem:[%s1066_s30] sm:$0xff]  ;;  %v279_v5 = vld [vmem:[%s1066_s30 + $0x8] sm:$0xff]  ;;  %v280_v6 = vld [vmem:[%s1066_s30 + $0x10] sm:$0xff]  ;;  %s1170_s13 = scalar_lea.vmem %s1329_s4, %s954_s10 }
  0x10   : > { %918 = vmatmul.msk.f32.vlgmr.msra.gmra.mxu2 %vm308_vm0, %v278_v4  ;;  %934 = vmatmul.msk.f32.vlgmr.msra.gmra.mxu3 %vm308_vm0, %v278_v4  ;;  %v281_v7 = vld [vmem:[%s1066_s30 + $0x18] sm:$0xff]  ;;  %v282_v8 = vld [vmem:[%s1066_s30 + $0x20] sm:$0xff]  ;;  %v283_v9 = vld [vmem:[%s1066_s30 + $0x28] sm:$0xff] }
  0x11   : > { %886 = vmatmul.msk.f32.vlgmr.msra.gmra.mxu0 %vm308_vm0, %v278_v4  ;;  %902 = vmatmul.msk.f32.vlgmr.msra.gmra.mxu1 %vm308_vm0, %v278_v4  ;;  %v284_v10 = vld [vmem:[%s1066_s30 + $0x30] sm:$0xff]  ;;  %v285_v11 = vld [vmem:[%s1066_s30 + $0x38] sm:$0xff]  ;;  %v286_v12 = vld [vmem:[%s1066_s30 + $0x40] sm:$0xff] }
  0x12   : > { %v287_v13 = vld [vmem:[%s1066_s30 + $0x48] sm:$0xff]  ;;  %v288_v14 = vld [vmem:[%s1066_s30 + $0x50] sm:$0xff]  ;;  %v289_v15 = vld [vmem:[%s1066_s30 + $0x58] sm:$0xff] }
  0x13   : > { %v290_v16 = vld [vmem:[%s1066_s30 + $0x60] sm:$0xff]  ;;  %v291_v17 = vld [vmem:[%s1066_s30 + $0x68] sm:$0xff]  ;;  %v292_v18 = vld [vmem:[%s1066_s30 + $0x70] sm:$0xff] }
  0x14   : > { %v293_v19 = vld [vmem:[%s1066_s30 + $0x78] sm:$0xff]  ;;  %v617_v24 = vld [vmem:[%s1156_s9] sm:$0xff]  ;;  %v618_v26 = vld [vmem:[%s1156_s9 + $0x8] sm:$0xff] }
  0x15   : > { %v619_v52 = vld [vmem:[%s1156_s9 + $0x10] sm:$0xff]  ;;  %v620_v54 = vld [vmem:[%s1156_s9 + $0x18] sm:$0xff] }
  0x18   : > { %919 = vmatmul.msk.f32.gmra.mxu2 %vm308_vm0, %v279_v5  ;;  %935 = vmatmul.msk.f32.gmra.mxu3 %vm308_vm0, %v279_v5 }
  0x19   : > { %887 = vmatmul.msk.f32.gmra.mxu0 %vm308_vm0, %v279_v5  ;;  %903 = vmatmul.msk.f32.gmra.mxu1 %vm308_vm0, %v279_v5 }
  0x20   : > { %920 = vmatmul.msk.f32.gmra.mxu2 %vm308_vm0, %v280_v6  ;;  %936 = vmatmul.msk.f32.gmra.mxu3 %vm308_vm0, %v280_v6 }
  0x21   : > { %888 = vmatmul.msk.f32.gmra.mxu0 %vm308_vm0, %v280_v6  ;;  %904 = vmatmul.msk.f32.gmra.mxu1 %vm308_vm0, %v280_v6 }
  0x28   : > { %921 = vmatmul.msk.f32.gmra.mxu2 %vm308_vm0, %v281_v7  ;;  %937 = vmatmul.msk.f32.gmra.mxu3 %vm308_vm0, %v281_v7 }
  0x29   : > { %889 = vmatmul.msk.f32.gmra.mxu0 %vm308_vm0, %v281_v7  ;;  %905 = vmatmul.msk.f32.gmra.mxu1 %vm308_vm0, %v281_v7 }
  0x30   : > { %922 = vmatmul.msk.f32.gmra.mxu2 %vm308_vm0, %v282_v8  ;;  %938 = vmatmul.msk.f32.gmra.mxu3 %vm308_vm0, %v282_v8 }
  0x31   : > { %890 = vmatmul.msk.f32.gmra.mxu0 %vm308_vm0, %v282_v8  ;;  %906 = vmatmul.msk.f32.gmra.mxu1 %vm308_vm0, %v282_v8 }
  0x38   : > { %923 = vmatmul.msk.f32.gmra.mxu2 %vm308_vm0, %v283_v9  ;;  %939 = vmatmul.msk.f32.gmra.mxu3 %vm308_vm0, %v283_v9 }
  0x39   : > { %891 = vmatmul.msk.f32.gmra.mxu0 %vm308_vm0, %v283_v9  ;;  %907 = vmatmul.msk.f32.gmra.mxu1 %vm308_vm0, %v283_v9 }
  0x40   : > { %924 = vmatmul.msk.f32.gmra.mxu2 %vm308_vm0, %v284_v10  ;;  %940 = vmatmul.msk.f32.gmra.mxu3 %vm308_vm0, %v284_v10 }
  0x41   : > { %892 = vmatmul.msk.f32.gmra.mxu0 %vm308_vm0, %v284_v10  ;;  %908 = vmatmul.msk.f32.gmra.mxu1 %vm308_vm0, %v284_v10 }
  0x48   : > { %925 = vmatmul.msk.f32.gmra.mxu2 %vm308_vm0, %v285_v11  ;;  %941 = vmatmul.msk.f32.gmra.mxu3 %vm308_vm0, %v285_v11 }
  0x49   : > { %893 = vmatmul.msk.f32.gmra.mxu0 %vm308_vm0, %v285_v11  ;;  %909 = vmatmul.msk.f32.gmra.mxu1 %vm308_vm0, %v285_v11 }
  0x50   : > { %926 = vmatmul.msk.f32.gmra.mxu2 %vm308_vm0, %v286_v12  ;;  %942 = vmatmul.msk.f32.gmra.mxu3 %vm308_vm0, %v286_v12 }
  0x51   : > { %894 = vmatmul.msk.f32.gmra.mxu0 %vm308_vm0, %v286_v12  ;;  %910 = vmatmul.msk.f32.gmra.mxu1 %vm308_vm0, %v286_v12 }
  0x58   : > { %927 = vmatmul.msk.f32.gmra.mxu2 %vm308_vm0, %v287_v13  ;;  %943 = vmatmul.msk.f32.gmra.mxu3 %vm308_vm0, %v287_v13 }
  0x59   : > { %895 = vmatmul.msk.f32.gmra.mxu0 %vm308_vm0, %v287_v13  ;;  %911 = vmatmul.msk.f32.gmra.mxu1 %vm308_vm0, %v287_v13 }
  0x60   : > { %928 = vmatmul.msk.f32.gmra.mxu2 %vm308_vm0, %v288_v14  ;;  %944 = vmatmul.msk.f32.gmra.mxu3 %vm308_vm0, %v288_v14 }
  0x61   : > { %896 = vmatmul.msk.f32.gmra.mxu0 %vm308_vm0, %v288_v14  ;;  %912 = vmatmul.msk.f32.gmra.mxu1 %vm308_vm0, %v288_v14  ;;  %v621_v14 = vld [vmem:[%s1156_s9 + $0x20] sm:$0xff] }
  0x68   : > { %929 = vmatmul.msk.f32.gmra.mxu2 %vm308_vm0, %v289_v15  ;;  %945 = vmatmul.msk.f32.gmra.mxu3 %vm308_vm0, %v289_v15 }
  0x69   : > { %897 = vmatmul.msk.f32.gmra.mxu0 %vm308_vm0, %v289_v15  ;;  %913 = vmatmul.msk.f32.gmra.mxu1 %vm308_vm0, %v289_v15 }
  0x70   : > { %930 = vmatmul.msk.f32.gmra.mxu2 %vm308_vm0, %v290_v16  ;;  %946 = vmatmul.msk.f32.gmra.mxu3 %vm308_vm0, %v290_v16 }
  0x71   : > { %898 = vmatmul.msk.f32.gmra.mxu0 %vm308_vm0, %v290_v16  ;;  %914 = vmatmul.msk.f32.gmra.mxu1 %vm308_vm0, %v290_v16  ;;  %v622_v16 = vld [vmem:[%s1156_s9 + $0x28] sm:$0xff] }
  0x78   : > { %931 = vmatmul.msk.f32.gmra.mxu2 %vm308_vm0, %v291_v17  ;;  %947 = vmatmul.msk.f32.gmra.mxu3 %vm308_vm0, %v291_v17 }
  0x79   : > { %899 = vmatmul.msk.f32.gmra.mxu0 %vm308_vm0, %v291_v17  ;;  %915 = vmatmul.msk.f32.gmra.mxu1 %vm308_vm0, %v291_v17 }
  0x80   : > { %932 = vmatmul.msk.f32.gmra.mxu2 %vm308_vm0, %v292_v18  ;;  %948 = vmatmul.msk.f32.gmra.mxu3 %vm308_vm0, %v292_v18 }
  0x81   : > { %900 = vmatmul.msk.f32.gmra.mxu0 %vm308_vm0, %v292_v18  ;;  %916 = vmatmul.msk.f32.gmra.mxu1 %vm308_vm0, %v292_v18 }
  0x88   : > { %933 = vmatmul.msk.f32.gmra.mxu2 %vm308_vm0, %v293_v19  ;;  %949 = vmatmul.msk.f32.gmra.mxu3 %vm308_vm0, %v293_v19 }
  0x89   : > { %901 = vmatmul.msk.f32.gmra.mxu0 %vm308_vm0, %v293_v19  ;;  %917 = vmatmul.msk.f32.gmra.mxu1 %vm308_vm0, %v293_v19 }
  0x8e   : > { %v374_v23 = vpop.f32.mrf.mxu0  ;;  %v439_v25 = vpop.f32.mrf.mxu1 }
  0x8f   : > { %v375_v27 = vadd.f32 %v374_v23, %v1158_v21  ;;  %v440_v28 = vadd.f32 %v439_v25, %v1160_v22 }
  0x91   : > { %v633_v31 = vadd.f32 %v617_v24, %v375_v27  ;;  %v634_v32 = vadd.f32 %v618_v26, %v440_v28 }
  0x93   : > { %697 = vst [vmem:[%s1170_s13] sm:$0xff] %v633_v31  ;;  %v504_v33 = vpop.f32.mrf.mxu2  ;;  %v569_v34 = vpop.f32.mrf.mxu3 }
  0x94   : > { %698 = vst [vmem:[%s1170_s13 + $0x8] sm:$0xff] %v634_v32  ;;  %v505_v35 = vadd.f32 %v504_v33, %v1172_v29  ;;  %v570_v36 = vadd.f32 %v569_v34, %v1174_v30 }
  0x96   : > { %v635_v37 = vadd.f32 %v617_v24, %v505_v35  ;;  %v636_v38 = vadd.f32 %v618_v26, %v570_v36  ;;  %v377_v39 = vpop.f32.mrf.mxu0  ;;  %v442_v40 = vpop.f32.mrf.mxu1 }
  0x97   : > { %v378_v41 = vadd.f32 %v377_v39, %v1158_v21  ;;  %v443_v42 = vadd.f32 %v442_v40, %v1160_v22 }
  0x98   : > { %699 = vst [vmem:[%s1170_s13 + $0x10] sm:$0xff] %v635_v37 }
  0x99   : > { %700 = vst [vmem:[%s1170_s13 + $0x18] sm:$0xff] %v636_v38  ;;  %v637_v43 = vadd.f32 %v617_v24, %v378_v41  ;;  %v638_v44 = vadd.f32 %v618_v26, %v443_v42 }
  0x9b   : > { %701 = vst [vmem:[%s1170_s13 + $0x20] sm:$0xff] %v637_v43  ;;  %v507_v45 = vpop.f32.mrf.mxu2  ;;  %v572_v46 = vpop.f32.mrf.mxu3 }
  0x9c   : > { %702 = vst [vmem:[%s1170_s13 + $0x28] sm:$0xff] %v638_v44  ;;  %v508_v47 = vadd.f32 %v507_v45, %v1172_v29  ;;  %v573_v48 = vadd.f32 %v572_v46, %v1174_v30  ;;  %v623_v44 = vld [vmem:[%s1156_s9 + $0x30] sm:$0xff]  ;;  %v624_v46 = vld [vmem:[%s1156_s9 + $0x38] sm:$0xff] }
  0x9e   : > { %v639_v49 = vadd.f32 %v617_v24, %v508_v47  ;;  %v640_v50 = vadd.f32 %v618_v26, %v573_v48  ;;  %v380_v51 = vpop.f32.mrf.mxu0  ;;  %v445_v53 = vpop.f32.mrf.mxu1 }
  0x9f   : > { %v381_v55 = vadd.f32 %v380_v51, %v1158_v21  ;;  %v446_v56 = vadd.f32 %v445_v53, %v1160_v22 }
  0xa0   : > { %703 = vst [vmem:[%s1170_s13 + $0x30] sm:$0xff] %v639_v49 }
  0xa1   : > { %704 = vst [vmem:[%s1170_s13 + $0x38] sm:$0xff] %v640_v50  ;;  %v641_v57 = vadd.f32 %v619_v52, %v381_v55  ;;  %v642_v58 = vadd.f32 %v620_v54, %v446_v56 }
  0xa3   : > { %705 = vst [vmem:[%s1170_s13 + $0x40] sm:$0xff] %v641_v57  ;;  %v510_v59 = vpop.f32.mrf.mxu2  ;;  %v575_v60 = vpop.f32.mrf.mxu3 }
  0xa4   : > { %706 = vst [vmem:[%s1170_s13 + $0x48] sm:$0xff] %v642_v58  ;;  %v511_v61 = vadd.f32 %v510_v59, %v1172_v29  ;;  %v576_v62 = vadd.f32 %v575_v60, %v1174_v30 }
  0xa6   : > { %v643_v63 = vadd.f32 %v619_v52, %v511_v61  ;;  %v644_v0 = vadd.f32 %v620_v54, %v576_v62  ;;  %v383_v1 = vpop.f32.mrf.mxu0  ;;  %v448_v2 = vpop.f32.mrf.mxu1 }
  0xa7   : > { %v384_v3 = vadd.f32 %v383_v1, %v1158_v21  ;;  %v449_v4 = vadd.f32 %v448_v2, %v1160_v22 }
  0xa8   : > { %707 = vst [vmem:[%s1170_s13 + $0x50] sm:$0xff] %v643_v63 }
  0xa9   : > { %708 = vst [vmem:[%s1170_s13 + $0x58] sm:$0xff] %v644_v0  ;;  %v645_v5 = vadd.f32 %v619_v52, %v384_v3  ;;  %v646_v6 = vadd.f32 %v620_v54, %v449_v4 }
  0xab   : > { %709 = vst [vmem:[%s1170_s13 + $0x60] sm:$0xff] %v645_v5  ;;  %v513_v7 = vpop.f32.mrf.mxu2  ;;  %v578_v8 = vpop.f32.mrf.mxu3 }
  0xac   : > { %710 = vst [vmem:[%s1170_s13 + $0x68] sm:$0xff] %v646_v6  ;;  %v514_v9 = vadd.f32 %v513_v7, %v1172_v29  ;;  %v579_v10 = vadd.f32 %v578_v8, %v1174_v30  ;;  %v625_v6 = vld [vmem:[%s1156_s9 + $0x40] sm:$0xff]  ;;  %v626_v8 = vld [vmem:[%s1156_s9 + $0x48] sm:$0xff] }
  0xae   : > { %v647_v11 = vadd.f32 %v619_v52, %v514_v9  ;;  %v648_v12 = vadd.f32 %v620_v54, %v579_v10  ;;  %v386_v13 = vpop.f32.mrf.mxu0  ;;  %v451_v15 = vpop.f32.mrf.mxu1 }
  0xaf   : > { %v387_v17 = vadd.f32 %v386_v13, %v1158_v21  ;;  %v452_v18 = vadd.f32 %v451_v15, %v1160_v22 }
  0xb0   : > { %711 = vst [vmem:[%s1170_s13 + $0x70] sm:$0xff] %v647_v11 }
  0xb1   : > { %712 = vst [vmem:[%s1170_s13 + $0x78] sm:$0xff] %v648_v12  ;;  %v649_v19 = vadd.f32 %v621_v14, %v387_v17  ;;  %v650_v20 = vadd.f32 %v622_v16, %v452_v18 }
  0xb3   : > { %713 = vst [vmem:[%s1170_s13 + $0x80] sm:$0xff] %v649_v19  ;;  %v516_v23 = vpop.f32.mrf.mxu2  ;;  %v581_v24 = vpop.f32.mrf.mxu3 }
  0xb4   : > { %714 = vst [vmem:[%s1170_s13 + $0x88] sm:$0xff] %v650_v20  ;;  %v517_v25 = vadd.f32 %v516_v23, %v1172_v29  ;;  %v582_v26 = vadd.f32 %v581_v24, %v1174_v30 }
  0xb6   : > { %v651_v27 = vadd.f32 %v621_v14, %v517_v25  ;;  %v652_v28 = vadd.f32 %v622_v16, %v582_v26  ;;  %v389_v31 = vpop.f32.mrf.mxu0  ;;  %v454_v32 = vpop.f32.mrf.mxu1 }
  0xb7   : > { %v390_v33 = vadd.f32 %v389_v31, %v1158_v21  ;;  %v455_v34 = vadd.f32 %v454_v32, %v1160_v22 }
  0xb8   : > { %715 = vst [vmem:[%s1170_s13 + $0x90] sm:$0xff] %v651_v27 }
  0xb9   : > { %716 = vst [vmem:[%s1170_s13 + $0x98] sm:$0xff] %v652_v28  ;;  %v653_v35 = vadd.f32 %v621_v14, %v390_v33  ;;  %v654_v36 = vadd.f32 %v622_v16, %v455_v34 }
  0xbb   : > { %717 = vst [vmem:[%s1170_s13 + $0xa0] sm:$0xff] %v653_v35  ;;  %v519_v37 = vpop.f32.mrf.mxu2  ;;  %v584_v38 = vpop.f32.mrf.mxu3 }
  0xbc   : > { %718 = vst [vmem:[%s1170_s13 + $0xa8] sm:$0xff] %v654_v36  ;;  %v520_v39 = vadd.f32 %v519_v37, %v1172_v29  ;;  %v585_v40 = vadd.f32 %v584_v38, %v1174_v30  ;;  %v627_v36 = vld [vmem:[%s1156_s9 + $0x50] sm:$0xff]  ;;  %v628_v38 = vld [vmem:[%s1156_s9 + $0x58] sm:$0xff] }
  0xbe   : > { %v655_v41 = vadd.f32 %v621_v14, %v520_v39  ;;  %v656_v42 = vadd.f32 %v622_v16, %v585_v40  ;;  %v392_v43 = vpop.f32.mrf.mxu0  ;;  %v457_v45 = vpop.f32.mrf.mxu1 }
  0xbf   : > { %v393_v47 = vadd.f32 %v392_v43, %v1158_v21  ;;  %v458_v48 = vadd.f32 %v457_v45, %v1160_v22 }
  0xc0   : > { %719 = vst [vmem:[%s1170_s13 + $0xb0] sm:$0xff] %v655_v41 }
  0xc1   : > { %720 = vst [vmem:[%s1170_s13 + $0xb8] sm:$0xff] %v656_v42  ;;  %v657_v49 = vadd.f32 %v623_v44, %v393_v47  ;;  %v658_v50 = vadd.f32 %v624_v46, %v458_v48 }
  0xc3   : > { %721 = vst [vmem:[%s1170_s13 + $0xc0] sm:$0xff] %v657_v49  ;;  %v522_v51 = vpop.f32.mrf.mxu2  ;;  %v587_v52 = vpop.f32.mrf.mxu3 }
  0xc4   : > { %722 = vst [vmem:[%s1170_s13 + $0xc8] sm:$0xff] %v658_v50  ;;  %v523_v53 = vadd.f32 %v522_v51, %v1172_v29  ;;  %v588_v54 = vadd.f32 %v587_v52, %v1174_v30 }
  0xc6   : > { %v659_v55 = vadd.f32 %v623_v44, %v523_v53  ;;  %v660_v56 = vadd.f32 %v624_v46, %v588_v54  ;;  %v395_v57 = vpop.f32.mrf.mxu0  ;;  %v460_v58 = vpop.f32.mrf.mxu1 }
  0xc7   : > { %v396_v59 = vadd.f32 %v395_v57, %v1158_v21  ;;  %v461_v60 = vadd.f32 %v460_v58, %v1160_v22 }
  0xc8   : > { %723 = vst [vmem:[%s1170_s13 + $0xd0] sm:$0xff] %v659_v55 }
  0xc9   : > { %724 = vst [vmem:[%s1170_s13 + $0xd8] sm:$0xff] %v660_v56  ;;  %v661_v61 = vadd.f32 %v623_v44, %v396_v59  ;;  %v662_v62 = vadd.f32 %v624_v46, %v461_v60 }
  0xcb   : > { %725 = vst [vmem:[%s1170_s13 + $0xe0] sm:$0xff] %v661_v61  ;;  %v525_v63 = vpop.f32.mrf.mxu2  ;;  %v590_v0 = vpop.f32.mrf.mxu3 }
  0xcc   : > { %726 = vst [vmem:[%s1170_s13 + $0xe8] sm:$0xff] %v662_v62  ;;  %v526_v1 = vadd.f32 %v525_v63, %v1172_v29  ;;  %v591_v2 = vadd.f32 %v590_v0, %v1174_v30  ;;  %v629_v62 = vld [vmem:[%s1156_s9 + $0x60] sm:$0xff]  ;;  %v630_v0 = vld [vmem:[%s1156_s9 + $0x68] sm:$0xff] }
  0xce   : > { %v663_v3 = vadd.f32 %v623_v44, %v526_v1  ;;  %v664_v4 = vadd.f32 %v624_v46, %v591_v2  ;;  %v398_v5 = vpop.f32.mrf.mxu0  ;;  %v463_v7 = vpop.f32.mrf.mxu1 }
  0xcf   : > { %v399_v9 = vadd.f32 %v398_v5, %v1158_v21  ;;  %v464_v10 = vadd.f32 %v463_v7, %v1160_v22 }
  0xd0   : > { %727 = vst [vmem:[%s1170_s13 + $0xf0] sm:$0xff] %v663_v3 }
  0xd1   : > { %728 = vst [vmem:[%s1170_s13 + $0xf8] sm:$0xff] %v664_v4  ;;  %v665_v11 = vadd.f32 %v625_v6, %v399_v9  ;;  %v666_v12 = vadd.f32 %v626_v8, %v464_v10 }
  0xd3   : > { %729 = vst [vmem:[%s1170_s13 + $0x100] sm:$0xff] %v665_v11  ;;  %v528_v13 = vpop.f32.mrf.mxu2  ;;  %v593_v14 = vpop.f32.mrf.mxu3 }
  0xd4   : > { %730 = vst [vmem:[%s1170_s13 + $0x108] sm:$0xff] %v666_v12  ;;  %v529_v15 = vadd.f32 %v528_v13, %v1172_v29  ;;  %v594_v16 = vadd.f32 %v593_v14, %v1174_v30 }
  0xd6   : > { %v667_v17 = vadd.f32 %v625_v6, %v529_v15  ;;  %v668_v18 = vadd.f32 %v626_v8, %v594_v16  ;;  %v401_v19 = vpop.f32.mrf.mxu0  ;;  %v466_v20 = vpop.f32.mrf.mxu1 }
  0xd7   : > { %v402_v23 = vadd.f32 %v401_v19, %v1158_v21  ;;  %v467_v24 = vadd.f32 %v466_v20, %v1160_v22 }
  0xd8   : > { %731 = vst [vmem:[%s1170_s13 + $0x110] sm:$0xff] %v667_v17 }
  0xd9   : > { %732 = vst [vmem:[%s1170_s13 + $0x118] sm:$0xff] %v668_v18  ;;  %v669_v25 = vadd.f32 %v625_v6, %v402_v23  ;;  %v670_v26 = vadd.f32 %v626_v8, %v467_v24 }
  0xdb   : > { %733 = vst [vmem:[%s1170_s13 + $0x120] sm:$0xff] %v669_v25  ;;  %v531_v27 = vpop.f32.mrf.mxu2  ;;  %v596_v28 = vpop.f32.mrf.mxu3 }
  0xdc   : > { %734 = vst [vmem:[%s1170_s13 + $0x128] sm:$0xff] %v670_v26  ;;  %v532_v31 = vadd.f32 %v531_v27, %v1172_v29  ;;  %v597_v32 = vadd.f32 %v596_v28, %v1174_v30  ;;  %v631_v26 = vld [vmem:[%s1156_s9 + $0x70] sm:$0xff]  ;;  %v632_v28 = vld [vmem:[%s1156_s9 + $0x78] sm:$0xff] }
  0xde   : > { %v671_v33 = vadd.f32 %v625_v6, %v532_v31  ;;  %v672_v34 = vadd.f32 %v626_v8, %v597_v32  ;;  %v404_v35 = vpop.f32.mrf.mxu0  ;;  %v469_v37 = vpop.f32.mrf.mxu1 }
  0xdf   : > { %v405_v39 = vadd.f32 %v404_v35, %v1158_v21  ;;  %v470_v40 = vadd.f32 %v469_v37, %v1160_v22 }
  0xe0   : > { %735 = vst [vmem:[%s1170_s13 + $0x130] sm:$0xff] %v671_v33 }
  0xe1   : > { %736 = vst [vmem:[%s1170_s13 + $0x138] sm:$0xff] %v672_v34  ;;  %v673_v41 = vadd.f32 %v627_v36, %v405_v39  ;;  %v674_v42 = vadd.f32 %v628_v38, %v470_v40 }
  0xe3   : > { %737 = vst [vmem:[%s1170_s13 + $0x140] sm:$0xff] %v673_v41  ;;  %v534_v43 = vpop.f32.mrf.mxu2  ;;  %v599_v44 = vpop.f32.mrf.mxu3 }
  0xe4   : > { %738 = vst [vmem:[%s1170_s13 + $0x148] sm:$0xff] %v674_v42  ;;  %v535_v45 = vadd.f32 %v534_v43, %v1172_v29  ;;  %v600_v46 = vadd.f32 %v599_v44, %v1174_v30 }
  0xe6   : > { %v675_v47 = vadd.f32 %v627_v36, %v535_v45  ;;  %v676_v48 = vadd.f32 %v628_v38, %v600_v46  ;;  %v407_v49 = vpop.f32.mrf.mxu0  ;;  %v472_v50 = vpop.f32.mrf.mxu1 }
  0xe7   : > { %v408_v51 = vadd.f32 %v407_v49, %v1158_v21  ;;  %v473_v52 = vadd.f32 %v472_v50, %v1160_v22 }
  0xe8   : > { %739 = vst [vmem:[%s1170_s13 + $0x150] sm:$0xff] %v675_v47 }
  0xe9   : > { %740 = vst [vmem:[%s1170_s13 + $0x158] sm:$0xff] %v676_v48  ;;  %v677_v53 = vadd.f32 %v627_v36, %v408_v51  ;;  %v678_v54 = vadd.f32 %v628_v38, %v473_v52 }
  0xeb   : > { %741 = vst [vmem:[%s1170_s13 + $0x160] sm:$0xff] %v677_v53  ;;  %v537_v55 = vpop.f32.mrf.mxu2  ;;  %v602_v56 = vpop.f32.mrf.mxu3 }
  0xec   : > { %742 = vst [vmem:[%s1170_s13 + $0x168] sm:$0xff] %v678_v54  ;;  %v538_v57 = vadd.f32 %v537_v55, %v1172_v29  ;;  %v603_v58 = vadd.f32 %v602_v56, %v1174_v30 }
  0xee   : > { %v679_v59 = vadd.f32 %v627_v36, %v538_v57  ;;  %v680_v60 = vadd.f32 %v628_v38, %v603_v58  ;;  %v410_v61 = vpop.f32.mrf.mxu0  ;;  %v475_v63 = vpop.f32.mrf.mxu1 }
  0xef   : > { %v411_v1 = vadd.f32 %v410_v61, %v1158_v21  ;;  %v476_v2 = vadd.f32 %v475_v63, %v1160_v22 }
  0xf0   : > { %743 = vst [vmem:[%s1170_s13 + $0x170] sm:$0xff] %v679_v59 }
  0xf1   : > { %744 = vst [vmem:[%s1170_s13 + $0x178] sm:$0xff] %v680_v60  ;;  %v681_v3 = vadd.f32 %v629_v62, %v411_v1  ;;  %v682_v4 = vadd.f32 %v630_v0, %v476_v2 }
  0xf3   : > { %745 = vst [vmem:[%s1170_s13 + $0x180] sm:$0xff] %v681_v3  ;;  %v540_v5 = vpop.f32.mrf.mxu2  ;;  %v605_v6 = vpop.f32.mrf.mxu3 }
  0xf4   : > { %746 = vst [vmem:[%s1170_s13 + $0x188] sm:$0xff] %v682_v4  ;;  %v541_v7 = vadd.f32 %v540_v5, %v1172_v29  ;;  %v606_v8 = vadd.f32 %v605_v6, %v1174_v30 }
  0xf6   : > { %v683_v9 = vadd.f32 %v629_v62, %v541_v7  ;;  %v684_v10 = vadd.f32 %v630_v0, %v606_v8  ;;  %v413_v11 = vpop.f32.mrf.mxu0  ;;  %v478_v12 = vpop.f32.mrf.mxu1 }
  0xf7   : > { %v414_v13 = vadd.f32 %v413_v11, %v1158_v21  ;;  %v479_v14 = vadd.f32 %v478_v12, %v1160_v22 }
  0xf8   : > { %747 = vst [vmem:[%s1170_s13 + $0x190] sm:$0xff] %v683_v9 }
  0xf9   : > { %748 = vst [vmem:[%s1170_s13 + $0x198] sm:$0xff] %v684_v10  ;;  %v685_v15 = vadd.f32 %v629_v62, %v414_v13  ;;  %v686_v16 = vadd.f32 %v630_v0, %v479_v14 }
  0xfb   : > { %749 = vst [vmem:[%s1170_s13 + $0x1a0] sm:$0xff] %v685_v15  ;;  %v543_v17 = vpop.f32.mrf.mxu2  ;;  %v608_v18 = vpop.f32.mrf.mxu3 }
  0xfc   : > { %750 = vst [vmem:[%s1170_s13 + $0x1a8] sm:$0xff] %v686_v16  ;;  %v544_v19 = vadd.f32 %v543_v17, %v1172_v29  ;;  %v609_v20 = vadd.f32 %v608_v18, %v1174_v30 }
  0xfe   : > { %v687_v23 = vadd.f32 %v629_v62, %v544_v19  ;;  %v688_v24 = vadd.f32 %v630_v0, %v609_v20  ;;  %v416_v25 = vpop.f32.mrf.mxu0  ;;  %v481_v27 = vpop.f32.mrf.mxu1 }
  0xff   : > { %v417_v31 = vadd.f32 %v416_v25, %v1158_v21  ;;  %v482_v32 = vadd.f32 %v481_v27, %v1160_v22 }
 0x100   : > { %751 = vst [vmem:[%s1170_s13 + $0x1b0] sm:$0xff] %v687_v23 }
 0x101   : > { %752 = vst [vmem:[%s1170_s13 + $0x1b8] sm:$0xff] %v688_v24  ;;  %v689_v33 = vadd.f32 %v631_v26, %v417_v31  ;;  %v690_v34 = vadd.f32 %v632_v28, %v482_v32 }
 0x103   : > { %753 = vst [vmem:[%s1170_s13 + $0x1c0] sm:$0xff] %v689_v33  ;;  %v546_v35 = vpop.f32.mrf.mxu2  ;;  %v611_v36 = vpop.f32.mrf.mxu3 }
 0x104   : > { %754 = vst [vmem:[%s1170_s13 + $0x1c8] sm:$0xff] %v690_v34  ;;  %v547_v37 = vadd.f32 %v546_v35, %v1172_v29  ;;  %v612_v38 = vadd.f32 %v611_v36, %v1174_v30 }
 0x106   : > { %v691_v39 = vadd.f32 %v631_v26, %v547_v37  ;;  %v692_v40 = vadd.f32 %v632_v28, %v612_v38  ;;  %v419_v41 = vpop.f32.mrf.mxu0  ;;  %v484_v42 = vpop.f32.mrf.mxu1 }
 0x107   : > { %v420_v43 = vadd.f32 %v419_v41, %v1158_v21  ;;  %v485_v44 = vadd.f32 %v484_v42, %v1160_v22 }
 0x108   : > { %755 = vst [vmem:[%s1170_s13 + $0x1d0] sm:$0xff] %v691_v39 }
 0x109   : > { %756 = vst [vmem:[%s1170_s13 + $0x1d8] sm:$0xff] %v692_v40  ;;  %v693_v45 = vadd.f32 %v631_v26, %v420_v43  ;;  %v694_v46 = vadd.f32 %v632_v28, %v485_v44 }
 0x10b   : > { %757 = vst [vmem:[%s1170_s13 + $0x1e0] sm:$0xff] %v693_v45  ;;  %v549_v47 = vpop.f32.mrf.mxu2  ;;  %v614_v48 = vpop.f32.mrf.mxu3 }
 0x10c   : > { %758 = vst [vmem:[%s1170_s13 + $0x1e8] sm:$0xff] %v694_v46  ;;  %v550_v49 = vadd.f32 %v549_v47, %v1172_v29  ;;  %v615_v50 = vadd.f32 %v614_v48, %v1174_v30 }
 0x10e   : > { %v695_v51 = vadd.f32 %v631_v26, %v550_v49  ;;  %v696_v52 = vadd.f32 %v632_v28, %v615_v50 }
 0x110   : > { %759 = vst [vmem:[%s1170_s13 + $0x1f0] sm:$0xff] %v695_v51 }
 0x111   : > { %760 = vst [vmem:[%s1170_s13 + $0x1f8] sm:$0xff] %v696_v52 }
 0x112 PF: > { %s14_s17 = sadd.s32 1, %s1001_s17   ;;  %s1330_s15 = smov %s997_s16 }
 0x113   : > { %p11_p5 = scmp.ge.s32.totalorder %s14_s17, 4   ;;  %s1331_s16 = smov %s1333_s18 }
 0x115   :  { %13 = sbr.rel (!%p11_p5) target bundleno = 2 (0x2), region = 69 }

</bundles_post_ra>
